<compile_context>
chip_gen: v6e
topology: v6e:2x2x1
jax: 0.10.0
libtpu: 0.0.40
codegen_flags: <defaults>
</compile_context>

<pallas_src>
import functools

import jax
import jax.numpy as jnp
from jax.experimental import pallas as pl
from jax.experimental.pallas import tpu as pltpu

_LANE = 128
_SUBLANE = 8


def _round_up(x, m):
    return (x + m - 1) // m * m


def _mlp2_kernel(x_ref, w0_ref, b0_ref, w1_ref, b1_ref, o_ref):
    """One batch tile: out = sigmoid(x @ W0t + b0) @ W1t + b1.

    Weights arrive pre-transposed (in, out) and pre-cast; biases arrive f32.
    """
    x = x_ref[...]

    # Layer 0 -> MXU, f32 accumulation; bias add + sigmoid in f32 (EUP).
    h = jnp.dot(x, w0_ref[...], preferred_element_type=jnp.float32)
    h = jax.nn.sigmoid(h + b0_ref[...])

    # Layer 1 -> MXU, f32 accumulation.  (astype is a no-op when f32.)
    out = jnp.dot(h.astype(w1_ref.dtype), w1_ref[...],
                  preferred_element_type=jnp.float32)
    out = out + b1_ref[...]

    o_ref[...] = out.astype(o_ref.dtype)


@functools.partial(jax.jit, static_argnames=("compute_dtype", "block_rows"))
def nn_forward(x, w0, b0, w1, b1, *, compute_dtype=jnp.float32, block_rows=512):
    """Fused 2-layer MLP forward.

    x : [B, nh]        activations
    w0: [nh, nh], b0: [nh]      (PyTorch nn.Linear layout: (out, in))
    w1: [out, nh], b1: [out]
    """
    B, nh = x.shape
    out_size = w1.shape[0]

    # Lane-dense (multiple-of-128) feature dims; sublane-aligned batch tiles.
    nh_p = _round_up(nh, _LANE)
    out_p = _round_up(out_size, _LANE)
    tb = block_rows if B >= block_rows else _round_up(max(B, 1), _SUBLANE)
    b_p = _round_up(B, tb)

    # One-time wrapper-side prep: cast, transpose to (in, out), zero-pad.
    w0t = jnp.zeros((nh_p, nh_p), compute_dtype).at[:nh, :nh].set(
        w0.T.astype(compute_dtype))
    w1t = jnp.zeros((nh_p, out_p), compute_dtype).at[:nh, :out_size].set(
        w1.T.astype(compute_dtype))
    b0p = jnp.zeros((1, nh_p), jnp.float32).at[:, :nh].set(
        b0.reshape(1, -1).astype(jnp.float32))
    b1p = jnp.zeros((1, out_p), jnp.float32).at[:, :out_size].set(
        b1.reshape(1, -1).astype(jnp.float32))
    xp = jnp.zeros((b_p, nh_p), compute_dtype).at[:B, :nh].set(
        x.astype(compute_dtype))

    grid = (b_p // tb,)
    out_padded = pl.pallas_call(
        _mlp2_kernel,
        out_shape=jax.ShapeDtypeStruct((b_p, out_p), x.dtype),
        grid=grid,
        in_specs=[
            pl.BlockSpec((tb, nh_p), lambda i: (i, 0)),     # x tile (pipelined)
            pl.BlockSpec((nh_p, nh_p), lambda i: (0, 0)),   # W0t resident
            pl.BlockSpec((1, nh_p), lambda i: (0, 0)),      # b0 resident
            pl.BlockSpec((nh_p, out_p), lambda i: (0, 0)),  # W1t resident
            pl.BlockSpec((1, out_p), lambda i: (0, 0)),     # b1 resident
        ],
        out_specs=pl.BlockSpec((tb, out_p), lambda i: (i, 0)),
        compiler_params=pltpu.CompilerParams(
            dimension_semantics=("parallel",),
        ),
    )(xp, w0t, b0p, w1t, b1p)

    return out_padded[:B, :out_size]


def init_params(key, nh, out_size, initrange=0.1):
    """Mirror NN.init_weights: bias = 0, weight ~ U(-initrange, initrange)."""
    k0, k1 = jax.random.split(key)
    w0 = jax.random.uniform(k0, (nh, nh), jnp.float32, -initrange, initrange)
    b0 = jnp.zeros((nh,), jnp.float32)
    w1 = jax.random.uniform(k1, (out_size, nh), jnp.float32, -initrange, initrange)
    b1 = jnp.zeros((out_size,), jnp.float32)
    return w0, b0, w1, b1


def nn_reference(x, w0, b0, w1, b1):
    """Pure-JAX reference of the PyTorch forward (nlayers=2, dropout=0)."""
    h = x @ w0.T + b0
    h = jax.nn.sigmoid(h)
    return h @ w1.T + b1


if __name__ == "__main__":
    # nh = hidden = 32, nlayers = 2, outSize defaults to nh, dropout = 0.0
    nh = 32
    out_size = nh
    batch, seq = 2, 8            # flatten (batch, seq) -> rows of the matmul
    B = batch * seq

    key = jax.random.PRNGKey(0)
    kx, kp = jax.random.split(key)

    x = jax.random.normal(kx, (B, nh), jnp.float32)
    w0, b0, w1, b1 = init_params(kp, nh, out_size, initrange=0.1)

    out = nn_forward(x, w0, b0, w1, b1)
    jax.block_until_ready(out)

    ref = nn_reference(x, w0, b0, w1, b1)
    assert out.shape == (B, out_size)
    assert jnp.allclose(out, ref, atol=1e-5, rtol=1e-5), "mismatch vs reference"

    print("KERNEL_OK")
</pallas_src>

<mosaic_0001>
module attributes {stable_mosaic.version = 11 : i64} {
  func.func @_mlp2_kernel(%arg0: i32, %arg1: memref<16x128xf32, #tpu.memory_space<vmem>>, %arg2: memref<128x128xf32, #tpu.memory_space<vmem>>, %arg3: memref<1x128xf32, #tpu.memory_space<vmem>>, %arg4: memref<128x128xf32, #tpu.memory_space<vmem>>, %arg5: memref<1x128xf32, #tpu.memory_space<vmem>>, %arg6: memref<16x128xf32, #tpu.memory_space<vmem>>) attributes {dimension_semantics = [#tpu.dimension_semantics<parallel>], iteration_bounds = array<i64: 1>, scalar_prefetch = 0 : i64, scratch_operands = 0 : i64, tpu.core_type = #tpu.core_type<tc>, window_params = [{transform_indices = @transform_0, window_bounds = array<i64: 16, 128>}, {pipeline_mode = #tpu.pipeline_mode<synchronous>, transform_indices = @transform_1, window_bounds = array<i64: 128, 128>}, {pipeline_mode = #tpu.pipeline_mode<synchronous>, transform_indices = @transform_2, window_bounds = array<i64: 1, 128>}, {pipeline_mode = #tpu.pipeline_mode<synchronous>, transform_indices = @transform_3, window_bounds = array<i64: 128, 128>}, {pipeline_mode = #tpu.pipeline_mode<synchronous>, transform_indices = @transform_4, window_bounds = array<i64: 1, 128>}, {transform_indices = @transform_5, window_bounds = array<i64: 16, 128>}]} {
    %c0 = arith.constant 0 : index
    %c0_0 = arith.constant 0 : index
    %0 = vector.load %arg1[%c0, %c0_0] : memref<16x128xf32, #tpu.memory_space<vmem>>, vector<16x128xf32>
    %c0_1 = arith.constant 0 : index
    %c0_2 = arith.constant 0 : index
    %1 = vector.load %arg2[%c0_1, %c0_2] : memref<128x128xf32, #tpu.memory_space<vmem>>, vector<128x128xf32>
    %cst = arith.constant dense<0.000000e+00> : vector<16x128xf32>
    %2 = tpu.matmul %0, %1, %cst {dimension_numbers = #tpu.dot_dimension_numbers<[1], [0], [0], [1], [0, 0, 1, 1], [], []>} : vector<16x128xf32>, vector<128x128xf32>, vector<16x128xf32> -> vector<16x128xf32>
    %c0_3 = arith.constant 0 : index
    %c0_4 = arith.constant 0 : index
    %3 = vector.load %arg3[%c0_3, %c0_4] : memref<1x128xf32, #tpu.memory_space<vmem>>, vector<1x128xf32>
    %4 = vector.broadcast %3 : vector<1x128xf32> to vector<16x128xf32>
    %5 = arith.addf %2, %4 : vector<16x128xf32>
    %6 = arith.negf %5 : vector<16x128xf32>
    %7 = math.exp %6 : vector<16x128xf32>
    %cst_5 = arith.constant 1.000000e+00 : f32
    %8 = vector.broadcast %cst_5 : f32 to vector<16x128xf32>
    %9 = arith.addf %8, %7 : vector<16x128xf32>
    %10 = arith.divf %8, %9 : vector<16x128xf32>
    %c0_6 = arith.constant 0 : index
    %c0_7 = arith.constant 0 : index
    %11 = vector.load %arg4[%c0_6, %c0_7] : memref<128x128xf32, #tpu.memory_space<vmem>>, vector<128x128xf32>
    %cst_8 = arith.constant dense<0.000000e+00> : vector<16x128xf32>
    %12 = tpu.matmul %10, %11, %cst_8 {dimension_numbers = #tpu.dot_dimension_numbers<[1], [0], [0], [1], [0, 0, 1, 1], [], []>} : vector<16x128xf32>, vector<128x128xf32>, vector<16x128xf32> -> vector<16x128xf32>
    %c0_9 = arith.constant 0 : index
    %c0_10 = arith.constant 0 : index
    %13 = vector.load %arg5[%c0_9, %c0_10] : memref<1x128xf32, #tpu.memory_space<vmem>>, vector<1x128xf32>
    %14 = vector.broadcast %13 : vector<1x128xf32> to vector<16x128xf32>
    %15 = arith.addf %12, %14 : vector<16x128xf32>
    %c0_11 = arith.constant 0 : index
    %c0_12 = arith.constant 0 : index
    %16 = vector.load %arg6[%c0_11, %c0_12] : memref<16x128xf32, #tpu.memory_space<vmem>>, vector<16x128xf32>
    tpu.vector_store %arg6[%c0_11, %c0_12], %15 {strides = array<i32>} : memref<16x128xf32, #tpu.memory_space<vmem>>, vector<16x128xf32>,
    return
  }
  func.func @transform_0(%arg0: i32) -> (i32, i32) {
    %c0_i32 = arith.constant 0 : i32
    %c0_i32_0 = arith.constant 0 : i32
    return %arg0, %c0_i32 : i32, i32
  }
  func.func @transform_1(%arg0: i32) -> (i32, i32) {
    %c0_i32 = arith.constant 0 : i32
    %c0_i32_0 = arith.constant 0 : i32
    %c0_i32_1 = arith.constant 0 : i32
    return %c0_i32, %c0_i32_0 : i32, i32
  }
  func.func @transform_2(%arg0: i32) -> (i32, i32) {
    %c0_i32 = arith.constant 0 : i32
    %c0_i32_0 = arith.constant 0 : i32
    %c0_i32_1 = arith.constant 0 : i32
    return %c0_i32, %c0_i32_0 : i32, i32
  }
  func.func @transform_3(%arg0: i32) -> (i32, i32) {
    %c0_i32 = arith.constant 0 : i32
    %c0_i32_0 = arith.constant 0 : i32
    %c0_i32_1 = arith.constant 0 : i32
    return %c0_i32, %c0_i32_0 : i32, i32
  }
  func.func @transform_4(%arg0: i32) -> (i32, i32) {
    %c0_i32 = arith.constant 0 : i32
    %c0_i32_0 = arith.constant 0 : i32
    %c0_i32_1 = arith.constant 0 : i32
    return %c0_i32, %c0_i32_0 : i32, i32
  }
  func.func @transform_5(%arg0: i32) -> (i32, i32) {
    %c0_i32 = arith.constant 0 : i32
    %c0_i32_0 = arith.constant 0 : i32
    return %arg0, %c0_i32 : i32, i32
  }
}

</mosaic_0001>

<bundles_post_ra>
// kernel: nn_forward.1
= control target key start
LH: loop header
LB: loop body
LE: loop exit
PB: predicated region body
PF: predicated region fallthrough
CT: control target
= control target key end

     0   :  { %s536_s0 = inlined_call_operand.vmem [shape: f32[16,128], index: 0, kind: input, shape index: {}]   ;;  %s537_s1 = inlined_call_operand.vmem [shape: f32[128,128], index: 1, kind: input, shape index: {}]   ;;  %s538_s2 = inlined_call_operand.vmem [shape: f32[1,128], index: 2, kind: input, shape index: {}]   ;;  %s539_s3 = inlined_call_operand.vmem [shape: f32[128,128], index: 3, kind: input, shape index: {}]   ;;  %s540_s4 = inlined_call_operand.vmem [shape: f32[1,128], index: 4, kind: input, shape index: {}]   ;;  %s541_s5 = inlined_call_operand.hbm [shape: f32[16,128], index: 5, kind: output, shape index: {}]  }
   0x1   :  { %v38_v0 = vld [vmem:[%s537_s1 + $0x78] sm:$0xff]  ;;  %v37_v1 = vld [vmem:[%s537_s1 + $0x70] sm:$0xff]  ;;  %v36_v2 = vld [vmem:[%s537_s1 + $0x68] sm:$0xff] }
   0x2   :  { %289 = vmatprep.subr.mxu0 %v38_v0  ;;  %v35_v3 = vld [vmem:[%s537_s1 + $0x60] sm:$0xff]  ;;  %v34_v5 = vld [vmem:[%s537_s1 + $0x58] sm:$0xff] }
   0x3   :  { %290 = vmatpush3.msra.mxu0 %v38_v0  ;;  %v21_v4 = vld [vmem:[%s536_s0] sm:$0xff] }
   0x4   :  { %291 = vmatprep.subr.mxu0 %v37_v1  ;;  %321 = vmatprep.mubr.f32.mxu0 %v21_v4 }
   0x5   :  { %292 = vmatpush3.msra.mxu0 %v37_v1 }
   0x6   :  { %293 = vmatprep.subr.mxu0 %v36_v2 }
   0x7   :  { %294 = vmatpush3.msra.mxu0 %v36_v2 }
   0x8   :  { %10 = vsyncpa [#allocation3], 0  ;;  %295 = vmatprep.subr.mxu0 %v35_v3  ;;  %v33_v6 = vld [vmem:[%s537_s1 + $0x50] sm:$0xff]  ;;  %v32_v7 = vld [vmem:[%s537_s1 + $0x48] sm:$0xff]  ;;  %s392_s9 = smov [#allocation2]  }
   0x9   :  { %296 = vmatpush3.msra.mxu0 %v35_v3  ;;  %v31_v8 = vld [vmem:[%s537_s1 + $0x40] sm:$0xff]  ;;  %v30_v9 = vld [vmem:[%s537_s1 + $0x38] sm:$0xff]  ;;  %v29_v10 = vld [vmem:[%s537_s1 + $0x30] sm:$0xff]  ;;  %s238_s10 = sshll.u32 %s392_s9, 4  ;;  %s239_s10 = int_to_ptr.vmem [resolvable:$true] %s238_s10 }
   0xa   :  { %297 = vmatprep.subr.mxu0 %v34_v5  ;;  %v28_v11 = vld [vmem:[%s537_s1 + $0x28] sm:$0xff]  ;;  %v27_v12 = vld [vmem:[%s537_s1 + $0x20] sm:$0xff]  ;;  %v26_v13 = vld [vmem:[%s537_s1 + $0x18] sm:$0xff]  ;;  %s370_s11 = scalar_lea.vmem %s239_s10, 256  ;;  %p375_p1 = scmp.lt.s32.totalorder %s239_s10, %s239_s10 }
   0xb   :  { %298 = vmatpush3.msra.mxu0 %v34_v5  ;;  %v25_v14 = vld [vmem:[%s537_s1 + $0x10] sm:$0xff]  ;;  %v24_v15 = vld [vmem:[%s537_s1 + $0x8] sm:$0xff]  ;;  %v23_v16 = vld [vmem:[%s537_s1] sm:$0xff]  ;;  %p371_p0 = scmp.ne.s32.totalorder %s239_s10, %s370_s11  ;;  %p376_p2 = scmp.lt.s32.totalorder %s370_s11, %s370_s11 }
   0xc   :  { %299 = vmatprep.subr.mxu0 %v33_v6  ;;  %v22_v17 = vld [vmem:[%s536_s0 + $0x8] sm:$0xff]  ;;  %v148_v18 = vld [vmem:[%s539_s3 + $0x78] sm:$0xff]  ;;  %v147_v19 = vld [vmem:[%s539_s3 + $0x70] sm:$0xff] }
   0xd   :  { %300 = vmatpush3.msra.mxu0 %v33_v6  ;;  %324 = vmatprep.subr.mxu1 %v148_v18  ;;  %v146_v20 = vld [vmem:[%s539_s3 + $0x68] sm:$0xff]  ;;  %v145_v21 = vld [vmem:[%s539_s3 + $0x60] sm:$0xff]  ;;  %v144_v22 = vld [vmem:[%s539_s3 + $0x58] sm:$0xff]  ;;  %p377_p3 = por %p376_p2, %p375_p1 }
   0xe   :  { %301 = vmatprep.subr.mxu0 %v32_v7  ;;  %325 = vmatpush3.msra.mxu1 %v148_v18  ;;  %v143_v23 = vld [vmem:[%s539_s3 + $0x50] sm:$0xff]  ;;  %v142_v24 = vld [vmem:[%s539_s3 + $0x48] sm:$0xff]  ;;  %v141_v25 = vld [vmem:[%s539_s3 + $0x40] sm:$0xff] }
   0xf   :  { %302 = vmatpush3.msra.mxu0 %v32_v7  ;;  %326 = vmatprep.subr.mxu1 %v147_v19  ;;  %v140_v26 = vld [vmem:[%s539_s3 + $0x38] sm:$0xff]  ;;  %v139_v27 = vld [vmem:[%s539_s3 + $0x30] sm:$0xff]  ;;  %v138_v28 = vld [vmem:[%s539_s3 + $0x28] sm:$0xff]  ;;  %p378_p4 = pnand %p377_p3, %p371_p0 }
  0x10   :  { %303 = vmatprep.subr.mxu0 %v31_v8  ;;  %327 = vmatpush3.msra.mxu1 %v147_v19  ;;  %v137_v29 = vld [vmem:[%s539_s3 + $0x20] sm:$0xff]  ;;  %v136_v30 = vld [vmem:[%s539_s3 + $0x18] sm:$0xff]  ;;  %v135_v31 = vld [vmem:[%s539_s3 + $0x10] sm:$0xff] }
  0x11   :  { %304 = vmatpush3.msra.mxu0 %v31_v8  ;;  %328 = vmatprep.subr.mxu1 %v146_v20  ;;  %v134_v32 = vld [vmem:[%s539_s3 + $0x8] sm:$0xff]  ;;  %v133_v33 = vld [vmem:[%s539_s3] sm:$0xff] }
  0x12   :  { %305 = vmatprep.subr.mxu0 %v30_v9  ;;  %329 = vmatpush3.msra.mxu1 %v146_v20  ;;  %v249_v34 = vld [vmem:[%s538_s2] ss:$0 sm:$0xff] }
  0x13   :  { %306 = vmatpush3.msra.mxu0 %v30_v9  ;;  %330 = vmatprep.subr.mxu1 %v145_v21  ;;  %v252_v47 = vld [vmem:[%s540_s4] ss:$0 sm:$0xff] }
  0x14   :  { %307 = vmatprep.subr.mxu0 %v29_v10  ;;  %331 = vmatpush3.msra.mxu1 %v145_v21 }
  0x15   :  { %308 = vmatpush3.msra.mxu0 %v29_v10  ;;  %332 = vmatprep.subr.mxu1 %v144_v22 }
  0x16   :  { %309 = vmatprep.subr.mxu0 %v28_v11  ;;  %333 = vmatpush3.msra.mxu1 %v144_v22 }
  0x17   :  { %310 = vmatpush3.msra.mxu0 %v28_v11  ;;  %334 = vmatprep.subr.mxu1 %v143_v23 }
  0x18   :  { %311 = vmatprep.subr.mxu0 %v27_v12  ;;  %335 = vmatpush3.msra.mxu1 %v143_v23 }
  0x19   :  { %312 = vmatpush3.msra.mxu0 %v27_v12  ;;  %336 = vmatprep.subr.mxu1 %v142_v24 }
  0x1a   :  { %313 = vmatprep.subr.mxu0 %v26_v13  ;;  %337 = vmatpush3.msra.mxu1 %v142_v24 }
  0x1b   :  { %314 = vmatpush3.msra.mxu0 %v26_v13  ;;  %338 = vmatprep.subr.mxu1 %v141_v25 }
  0x1c   :  { %315 = vmatprep.subr.mxu0 %v25_v14  ;;  %339 = vmatpush3.msra.mxu1 %v141_v25 }
  0x1d   :  { %316 = vmatpush3.msra.mxu0 %v25_v14  ;;  %340 = vmatprep.subr.mxu1 %v140_v26 }
  0x1e   :  { %317 = vmatprep.subr.mxu0 %v24_v15  ;;  %341 = vmatpush3.msra.mxu1 %v140_v26 }
  0x1f   :  { %318 = vmatpush3.msra.mxu0 %v24_v15  ;;  %342 = vmatprep.subr.mxu1 %v139_v27 }
  0x20   :  { %319 = vmatprep.subr.mxu0 %v23_v16  ;;  %343 = vmatpush3.msra.mxu1 %v139_v27 }
  0x21   :  { %320 = vmatpush3.msra.mxu0 %v23_v16  ;;  %344 = vmatprep.subr.mxu1 %v138_v28 }
  0x22   :  { %322 = vmatmul.mubr.f32.vlgmr.msra.gmra.mxu0 %v22_v17  ;;  %345 = vmatpush3.msra.mxu1 %v138_v28 }
  0x23   :  { %346 = vmatprep.subr.mxu1 %v137_v29 }
  0x24   :  { %347 = vmatpush3.msra.mxu1 %v137_v29 }
  0x25   :  { %348 = vmatprep.subr.mxu1 %v136_v30 }
  0x26   :  { %349 = vmatpush3.msra.mxu1 %v136_v30 }
  0x27   :  { %350 = vmatprep.subr.mxu1 %v135_v31 }
  0x28   :  { %351 = vmatpush3.msra.mxu1 %v135_v31 }
  0x29   :  { %352 = vmatprep.subr.mxu1 %v134_v32 }
  0x2a   :  { %353 = vmatpush3.msra.mxu1 %v134_v32 }
  0x2b   :  { %354 = vmatprep.subr.mxu1 %v133_v33 }
  0x2c   :  { %355 = vmatpush3.msra.mxu1 %v133_v33 }
  0xe2   :  { %v323_v35 = vpop.f32.mrf.mxu0 }
  0xe3   :  { %v118_v36 = vadd.f32 %v323_v35, %v249_v34 }
  0xe4   :  { %v112_v37 = vpop.f32.mrf.mxu0 }
  0xe5   :  { %v251_v38 = vmul.f32 -1.442695, %v118_v36  ;;  %v113_v39 = vadd.f32 %v249_v34, %v112_v37 }
  0xe7   :  { %362 = vpow2.f32 %v251_v38  ;;  %v250_v40 = vmul.f32 -1.442695, %v113_v39 }
  0xe9   :  { %364 = vpow2.f32 %v250_v40 }
  0xf4   :  { %v363_v41 = vpop.eup %362 }
  0xf5   :  { %v128_v43 = vadd.f32 1.0, %v363_v41 }
  0xf6   :  { %v365_v42 = vpop.eup %364 }
  0xf7   :  { %v127_v44 = vadd.f32 1.0, %v365_v42 }
  0xf9   :  { %366 = vrcp.f32 %v127_v44 }
  0xfa   :  { %368 = vrcp.f32 %v128_v43 }
 0x106   :  { %v367_v45 = vpop.eup %366 }
 0x107   :  { %v369_v46 = vpop.eup %368  ;;  %356 = vmatprep.mubr.f32.mxu1 %v367_v45 }
 0x108   :  { %357 = vmatmul.mubr.f32.vlgmr.msra.gmra.mxu1 %v369_v46 }
 0x1c8   :  { %v358_v48 = vpop.f32.mrf.mxu1 }
 0x1c9   :  { %v228_v49 = vadd.f32 %v358_v48, %v252_v47 }
 0x1ca   :  { %v222_v50 = vpop.f32.mrf.mxu1 }
 0x1cb   :  { %232 = vst [vmem:[#allocation2 + $0x8] sm:$0xff] %v228_v49  ;;  %v223_v51 = vadd.f32 %v252_v47, %v222_v50 }
 0x1cd   :  { %231 = vst [vmem:[#allocation2] sm:$0xff] %v223_v51 }
 0x1ce   :  { %381 = shalt.err (!%p378_p4)
}
 0x1cf   :  { %s393_s12 = smov 128   ;;  %s394_s13 = smov 8  }
 0x1d0   :  { %244 = dma.vmem_to_hbm [thread:$0]  %s239_s10, 256, %s541_s5, [#allocation3], %s393_s12, %s393_s12, %s394_s13  }
 0x1d1   :  { %390 = dma.done.wait [#allocation3], 256  }
 0x1d2   :  { %391 = vsyncadd [#allocation3], 4294967040 }
 0x1d3   :  { %248 = vsyncpa [#allocation3], 1 }

</bundles_post_ra>
